<compile_context>
chip_gen: v6e
topology: v6e:2x2x1
jax: 0.10.0
libtpu: 0.0.40
codegen_flags: <defaults>
</compile_context>

<pallas_src>
import jax
import jax.numpy as jnp
from jax.experimental import pallas as pl
from jax.experimental.pallas import tpu as pltpu

BN_EPS = 1e-5      # nn.BatchNorm1d default eps
NORM_EPS = 1e-12   # F.normalize default eps
LANE = 128


def _stable_sigmoid(x):
    # Numerically safe sigmoid (never exponentiates a positive argument);
    # avoids relying on a lax.logistic lowering inside the kernel.
    z = jnp.exp(-jnp.abs(x))
    return jnp.where(x >= 0, 1.0 / (1.0 + z), z / (1.0 + z))


# ---------------------------------------------------------------------------
# Fused kernel: 3x (folded Linear+BN -> ReLU) -> concat -> normalize(dim=0)
#               -> Linear(cls_in, 1) -> Sigmoid
# ---------------------------------------------------------------------------
def moli_fused_kernel(exp_ref, mut_ref, cna_ref,
                      we_ref, be_ref,          # exp encoder (folded, [In,Out]/[1,Out])
                      wm_ref, bm_ref,          # mut encoder
                      wcn_ref, bcn_ref,        # cna encoder
                      wcls_ref, bcls_ref,      # classifier ([1, cls_in] / [1, 1])
                      out_ref):                # [B, 128] lane-dense slab
    e = jnp.maximum(
        jnp.dot(exp_ref[...], we_ref[...], preferred_element_type=jnp.float32)
        + be_ref[...], 0.0)
    m = jnp.maximum(
        jnp.dot(mut_ref[...], wm_ref[...], preferred_element_type=jnp.float32)
        + bm_ref[...], 0.0)
    c = jnp.maximum(
        jnp.dot(cna_ref[...], wcn_ref[...], preferred_element_type=jnp.float32)
        + bcn_ref[...], 0.0)
    omics = jnp.concatenate([e, m, c], axis=1)                    # [B, cls_in]

    # F.normalize(p=2, dim=0): per-column L2 over the batch, denom clamped at eps.
    # TODO(synk): if the batch is ever tiled across a grid, this dim=0 reduction
    #             must become a two-pass accumulate-then-finalize structure.
    col_norm = jnp.sqrt(jnp.sum(omics * omics, axis=0, keepdims=True))
    on = omics / jnp.maximum(col_norm, NORM_EPS)                  # [B, cls_in]

    # Classifier with out_dim == 1: VPU multiply + cross-lane reduce (skip MXU),
    # then sigmoid. Dropout = identity in eval.
    logits = jnp.sum(on * wcls_ref[...], axis=1, keepdims=True) + bcls_ref[...]
    sig = _stable_sigmoid(logits)                                  # [B, 1]

    # One unmasked lane-dense store: cols [0, cls_in) = normalized omics,
    # remaining cols = broadcast sigmoid (wrapper slices out column cls_in).
    pad = out_ref.shape[1] - on.shape[1]
    out_ref[...] = jnp.concatenate(
        [on, jnp.broadcast_to(sig, (on.shape[0], pad))], axis=1)


# ---------------------------------------------------------------------------
# Wrapper: fold BN into Linear, pre-transpose weights, single pallas_call
# ---------------------------------------------------------------------------
def fold_bn_into_linear(enc_params):
    """(W[Out,In], b, gamma, beta, mean, var) -> (W_t folded [In,Out], b folded [1,Out])."""
    w, b, gamma, beta, mean, var = enc_params
    scale = gamma * jax.lax.rsqrt(var + BN_EPS)        # [1, Out]
    w_t = w.T * scale                                  # [In, Out]
    b_f = (b - mean) * scale + beta                    # [1, Out]
    return w_t, b_f


@jax.jit
def moli_net_forward(exp_x, mut_x, cna_x, ese_p, mse_p, cse_p, cls_w, cls_b):
    we_t, be = fold_bn_into_linear(ese_p)
    wm_t, bm = fold_bn_into_linear(mse_p)
    wcn_t, bcn = fold_bn_into_linear(cse_p)

    B = exp_x.shape[0]
    cls_in = we_t.shape[1] + wm_t.shape[1] + wcn_t.shape[1]
    padded = ((cls_in + 1 + LANE - 1) // LANE) * LANE   # lane-dense output slab

    vmem = pl.BlockSpec(memory_space=pltpu.MemorySpace.VMEM)
    # TODO(synk): for realistic MOLI dims (gene-expression In ~10k-60k) switch the
    #             encoder matmuls to a K-tiled grid (BlockSpec + f32 VMEM accumulator,
    #             K axis 'arbitrary', batch 'parallel'; smaller tiles on v7x 64 MiB VMEM).
    combined = pl.pallas_call(
        moli_fused_kernel,
        out_shape=jax.ShapeDtypeStruct((B, padded), jnp.float32),
        in_specs=[vmem] * 11,
        out_specs=vmem,
    )(exp_x, mut_x, cna_x, we_t, be, wm_t, bm, wcn_t, bcn, cls_w, cls_b)

    omics = combined[:, :cls_in]
    output = combined[:, cls_in:cls_in + 1]
    return omics, output


# ---------------------------------------------------------------------------
# Parameter construction (deterministic, synthetic)
# ---------------------------------------------------------------------------
def make_encoder_params(key, in_dim, out_dim):
    k_w, k_b, k_g, k_be, k_m, k_v = jax.random.split(key, 6)
    bound = 1.0 / jnp.sqrt(in_dim)
    w = jax.random.uniform(k_w, (out_dim, in_dim), jnp.float32, -bound, bound)
    b = jax.random.uniform(k_b, (1, out_dim), jnp.float32, -bound, bound)
    gamma = 1.0 + 0.1 * jax.random.normal(k_g, (1, out_dim), jnp.float32)
    beta = 0.1 * jax.random.normal(k_be, (1, out_dim), jnp.float32)
    mean = 0.1 * jax.random.normal(k_m, (1, out_dim), jnp.float32)
    var = jnp.abs(1.0 + 0.1 * jax.random.normal(k_v, (1, out_dim), jnp.float32))
    return (w, b, gamma, beta, mean, var)


def make_linear_params(key, in_dim, out_dim):
    k_w, k_b = jax.random.split(key)
    bound = 1.0 / jnp.sqrt(in_dim)
    w = jax.random.uniform(k_w, (out_dim, in_dim), jnp.float32, -bound, bound)
    b = jax.random.uniform(k_b, (1, out_dim), jnp.float32, -bound, bound)
    return w, b


# ---------------------------------------------------------------------------
# Pure-JAX reference (faithful to the PyTorch module) for sanity check
# ---------------------------------------------------------------------------
def ref_encoder(x, params):
    w, b, gamma, beta, mean, var = params
    y = x @ w.T + b
    y = (y - mean) / jnp.sqrt(var + BN_EPS) * gamma + beta
    return jnp.maximum(y, 0.0)


def ref_forward(exp_x, mut_x, cna_x, ese_p, mse_p, cse_p, cls_w, cls_b):
    omics = jnp.concatenate(
        [ref_encoder(exp_x, ese_p), ref_encoder(mut_x, mse_p),
         ref_encoder(cna_x, cse_p)], axis=1)
    norm = jnp.maximum(jnp.linalg.norm(omics, axis=0, keepdims=True), NORM_EPS)
    omics = omics / norm
    logits = omics @ cls_w.T + cls_b
    return omics, jax.nn.sigmoid(logits)


if __name__ == "__main__":
    key = jax.random.PRNGKey(0)
    B = 8
    exp_in, exp_out = 64, 32
    mut_in, mut_out = 48, 16
    cna_in, cna_out = 40, 16
    cls_in = exp_out + mut_out + cna_out

    (k_xe, k_xm, k_xc, k_e, k_m, k_c, k_cls) = jax.random.split(key, 7)
    exp_x = jax.random.normal(k_xe, (B, exp_in), jnp.float32)
    mut_x = jax.random.normal(k_xm, (B, mut_in), jnp.float32)
    cna_x = jax.random.normal(k_xc, (B, cna_in), jnp.float32)

    ese_p = make_encoder_params(k_e, exp_in, exp_out)
    mse_p = make_encoder_params(k_m, mut_in, mut_out)
    cse_p = make_encoder_params(k_c, cna_in, cna_out)
    cls_w, cls_b = make_linear_params(k_cls, cls_in, 1)

    omics, output = moli_net_forward(exp_x, mut_x, cna_x,
                                     ese_p, mse_p, cse_p, cls_w, cls_b)
    jax.block_until_ready((omics, output))

    omics_ref, output_ref = ref_forward(exp_x, mut_x, cna_x,
                                        ese_p, mse_p, cse_p, cls_w, cls_b)
    assert omics.shape == (B, cls_in) and output.shape == (B, 1)
    assert jnp.allclose(omics, omics_ref, atol=1e-5, rtol=1e-5)
    assert jnp.allclose(output, output_ref, atol=1e-5, rtol=1e-5)
    print("KERNEL_OK")
</pallas_src>

<mosaic_0001>
module attributes {stable_mosaic.version = 11 : i64} {
  func.func @moli_fused_kernel(%arg0: memref<8x64xf32, #tpu.memory_space<vmem>>, %arg1: memref<8x48xf32, #tpu.memory_space<vmem>>, %arg2: memref<8x40xf32, #tpu.memory_space<vmem>>, %arg3: memref<64x32xf32, #tpu.memory_space<vmem>>, %arg4: memref<1x32xf32, #tpu.memory_space<vmem>>, %arg5: memref<48x16xf32, #tpu.memory_space<vmem>>, %arg6: memref<1x16xf32, #tpu.memory_space<vmem>>, %arg7: memref<40x16xf32, #tpu.memory_space<vmem>>, %arg8: memref<1x16xf32, #tpu.memory_space<vmem>>, %arg9: memref<1x64xf32, #tpu.memory_space<vmem>>, %arg10: memref<1x1xf32, #tpu.memory_space<vmem>>, %arg11: memref<8x128xf32, #tpu.memory_space<vmem>>) attributes {dimension_semantics = [], scalar_prefetch = 0 : i64, scratch_operands = 0 : i64, tpu.core_type = #tpu.core_type<tc>} {
    %c0 = arith.constant 0 : index
    %c0_0 = arith.constant 0 : index
    %0 = vector.load %arg0[%c0, %c0_0] : memref<8x64xf32, #tpu.memory_space<vmem>>, vector<8x64xf32>
    %c0_1 = arith.constant 0 : index
    %c0_2 = arith.constant 0 : index
    %1 = vector.load %arg3[%c0_1, %c0_2] : memref<64x32xf32, #tpu.memory_space<vmem>>, vector<64x32xf32>
    %cst = arith.constant dense<0.000000e+00> : vector<8x32xf32>
    %2 = tpu.matmul %0, %1, %cst {dimension_numbers = #tpu.dot_dimension_numbers<[1], [0], [0], [1], [0, 0, 1, 1], [], []>} : vector<8x64xf32>, vector<64x32xf32>, vector<8x32xf32> -> vector<8x32xf32>
    %c0_3 = arith.constant 0 : index
    %c0_4 = arith.constant 0 : index
    %3 = vector.load %arg4[%c0_3, %c0_4] : memref<1x32xf32, #tpu.memory_space<vmem>>, vector<1x32xf32>
    %4 = vector.broadcast %3 : vector<1x32xf32> to vector<8x32xf32>
    %5 = arith.addf %2, %4 : vector<8x32xf32>
    %cst_5 = arith.constant 0.000000e+00 : f32
    %6 = vector.broadcast %cst_5 : f32 to vector<8x32xf32>
    %7 = arith.maximumf %5, %6 : vector<8x32xf32>
    %c0_6 = arith.constant 0 : index
    %c0_7 = arith.constant 0 : index
    %8 = vector.load %arg1[%c0_6, %c0_7] : memref<8x48xf32, #tpu.memory_space<vmem>>, vector<8x48xf32>
    %c0_8 = arith.constant 0 : index
    %c0_9 = arith.constant 0 : index
    %9 = vector.load %arg5[%c0_8, %c0_9] : memref<48x16xf32, #tpu.memory_space<vmem>>, vector<48x16xf32>
    %cst_10 = arith.constant dense<0.000000e+00> : vector<8x16xf32>
    %10 = tpu.matmul %8, %9, %cst_10 {dimension_numbers = #tpu.dot_dimension_numbers<[1], [0], [0], [1], [0, 0, 1, 1], [], []>} : vector<8x48xf32>, vector<48x16xf32>, vector<8x16xf32> -> vector<8x16xf32>
    %c0_11 = arith.constant 0 : index
    %c0_12 = arith.constant 0 : index
    %11 = vector.load %arg6[%c0_11, %c0_12] : memref<1x16xf32, #tpu.memory_space<vmem>>, vector<1x16xf32>
    %12 = vector.broadcast %11 : vector<1x16xf32> to vector<8x16xf32>
    %13 = arith.addf %10, %12 : vector<8x16xf32>
    %cst_13 = arith.constant 0.000000e+00 : f32
    %14 = vector.broadcast %cst_13 : f32 to vector<8x16xf32>
    %15 = arith.maximumf %13, %14 : vector<8x16xf32>
    %c0_14 = arith.constant 0 : index
    %c0_15 = arith.constant 0 : index
    %16 = vector.load %arg2[%c0_14, %c0_15] : memref<8x40xf32, #tpu.memory_space<vmem>>, vector<8x40xf32>
    %c0_16 = arith.constant 0 : index
    %c0_17 = arith.constant 0 : index
    %17 = vector.load %arg7[%c0_16, %c0_17] : memref<40x16xf32, #tpu.memory_space<vmem>>, vector<40x16xf32>
    %cst_18 = arith.constant dense<0.000000e+00> : vector<8x16xf32>
    %18 = tpu.matmul %16, %17, %cst_18 {dimension_numbers = #tpu.dot_dimension_numbers<[1], [0], [0], [1], [0, 0, 1, 1], [], []>} : vector<8x40xf32>, vector<40x16xf32>, vector<8x16xf32> -> vector<8x16xf32>
    %c0_19 = arith.constant 0 : index
    %c0_20 = arith.constant 0 : index
    %19 = vector.load %arg8[%c0_19, %c0_20] : memref<1x16xf32, #tpu.memory_space<vmem>>, vector<1x16xf32>
    %20 = vector.broadcast %19 : vector<1x16xf32> to vector<8x16xf32>
    %21 = arith.addf %18, %20 : vector<8x16xf32>
    %cst_21 = arith.constant 0.000000e+00 : f32
    %22 = vector.broadcast %cst_21 : f32 to vector<8x16xf32>
    %23 = arith.maximumf %21, %22 : vector<8x16xf32>
    %24 = tpu.concatenate %7, %15, %23 in 1 : vector<8x32xf32>, vector<8x16xf32>, vector<8x16xf32> -> vector<8x64xf32>
    %25 = arith.mulf %24, %24 : vector<8x64xf32>
    %cst_22 = arith.constant dense<0.000000e+00> : vector<64xf32>
    %26 = vector.multi_reduction <add>, %25, %cst_22 [0] : vector<8x64xf32> to vector<64xf32>
    %27 = vector.shape_cast %26 : vector<64xf32> to vector<1x64xf32>
    %28 = math.sqrt %27 : vector<1x64xf32>
    %cst_23 = arith.constant 9.99999996E-13 : f32
    %29 = vector.broadcast %cst_23 : f32 to vector<1x64xf32>
    %30 = arith.maximumf %28, %29 : vector<1x64xf32>
    %31 = vector.broadcast %30 : vector<1x64xf32> to vector<8x64xf32>
    %32 = arith.divf %24, %31 : vector<8x64xf32>
    %c0_24 = arith.constant 0 : index
    %c0_25 = arith.constant 0 : index
    %33 = vector.load %arg9[%c0_24, %c0_25] : memref<1x64xf32, #tpu.memory_space<vmem>>, vector<1x64xf32>
    %34 = vector.broadcast %33 : vector<1x64xf32> to vector<8x64xf32>
    %35 = arith.mulf %32, %34 : vector<8x64xf32>
    %cst_26 = arith.constant dense<0.000000e+00> : vector<8xf32>
    %36 = vector.multi_reduction <add>, %35, %cst_26 [1] : vector<8x64xf32> to vector<8xf32>
    %37 = vector.shape_cast %36 : vector<8xf32> to vector<8x1xf32>
    %c0_27 = arith.constant 0 : index
    %c0_28 = arith.constant 0 : index
    %38 = vector.load %arg10[%c0_27, %c0_28] : memref<1x1xf32, #tpu.memory_space<vmem>>, vector<1x1xf32>
    %39 = vector.broadcast %38 : vector<1x1xf32> to vector<8x1xf32>
    %40 = arith.addf %37, %39 : vector<8x1xf32>
    %41 = math.absf %40 : vector<8x1xf32>
    %cst_29 = arith.constant 0.000000e+00 : f32
    %42 = vector.broadcast %cst_29 : f32 to vector<8x1xf32>
    %43 = arith.subf %42, %41 : vector<8x1xf32>
    %44 = math.exp %43 : vector<8x1xf32>
    %cst_30 = arith.constant 0.000000e+00 : f32
    %45 = vector.broadcast %cst_30 : f32 to vector<8x1xf32>
    %46 = arith.cmpf oge, %40, %45 : vector<8x1xf32>
    %cst_31 = arith.constant 1.000000e+00 : f32
    %47 = vector.broadcast %cst_31 : f32 to vector<8x1xf32>
    %48 = arith.addf %47, %44 : vector<8x1xf32>
    %cst_32 = arith.constant 1.000000e+00 : f32
    %49 = vector.broadcast %cst_32 : f32 to vector<8x1xf32>
    %50 = arith.divf %49, %48 : vector<8x1xf32>
    %cst_33 = arith.constant 1.000000e+00 : f32
    %51 = vector.broadcast %cst_33 : f32 to vector<8x1xf32>
    %52 = arith.addf %51, %44 : vector<8x1xf32>
    %53 = arith.divf %44, %52 : vector<8x1xf32>
    %54 = arith.select %46, %50, %53 : vector<8x1xi1>, vector<8x1xf32>
    %55 = vector.shape_cast %54 : vector<8x1xf32> to vector<8x1xf32>
    %56 = vector.broadcast %55 : vector<8x1xf32> to vector<8x64xf32>
    %57 = tpu.concatenate %32, %56 in 1 : vector<8x64xf32>, vector<8x64xf32> -> vector<8x128xf32>
    %c0_34 = arith.constant 0 : index
    %c0_35 = arith.constant 0 : index
    %58 = vector.load %arg11[%c0_34, %c0_35] : memref<8x128xf32, #tpu.memory_space<vmem>>, vector<8x128xf32>
    tpu.vector_store %arg11[%c0_34, %c0_35], %57 {strides = array<i32>} : memref<8x128xf32, #tpu.memory_space<vmem>>, vector<8x128xf32>,
    return
  }
}

</mosaic_0001>

<bundles_post_ra>
// kernel: moli_net_forward.1
= control target key start
LH: loop header
LB: loop body
LE: loop exit
PB: predicated region body
PF: predicated region fallthrough
CT: control target
= control target key end

     0   :  { %v469_v0 = vmov 0.0   ;;  %vm470_vm0 = vmmov 0   ;;  %vm145_vm1 = vcmask 392192   ;;  %vm233_vm2 = vcmask 326656   ;;  %s649_s5 = inlined_call_operand.vmem [shape: f32[48,16], index: 5, kind: input, shape index: {}]   ;;  %s650_s3 = inlined_call_operand.vmem [shape: f32[64,32], index: 3, kind: input, shape index: {}]   ;;  %s651_s1 = inlined_call_operand.vmem [shape: f32[8,48], index: 1, kind: input, shape index: {}]   ;;  %s652_s7 = inlined_call_operand.vmem [shape: f32[40,16], index: 7, kind: input, shape index: {}]   ;;  %s653_s2 = inlined_call_operand.vmem [shape: f32[8,40], index: 2, kind: input, shape index: {}]   ;;  %s654_s0 = inlined_call_operand.vmem [shape: f32[8,64], index: 0, kind: input, shape index: {}]   ;;  %s655_s6 = inlined_call_operand.vmem [shape: f32[1,16], index: 6, kind: input, shape index: {}]   ;;  %s656_s8 = inlined_call_operand.vmem [shape: f32[1,16], index: 8, kind: input, shape index: {}]   ;;  %s657_s10 = inlined_call_operand.<no memory space> [shape: f32[1,1], index: 10, kind: input, shape index: {}]   ;;  %s658_s4 = inlined_call_operand.vmem [shape: f32[1,32], index: 4, kind: input, shape index: {}]   ;;  %s659_s9 = inlined_call_operand.vmem [shape: f32[1,64], index: 9, kind: input, shape index: {}]   ;;  %s660_s11 = inlined_call_operand.vmem [shape: f32[8,128], index: 11, kind: output, shape index: {}]  }
   0x1   :  { %426 = vmatprep.subr.mxu1 %v469_v0  ;;  %v137_v1 = vld [vmem:[%s649_s5 + $0x28] sm:$0xff]  ;;  %v136_v2 = vld [vmem:[%s649_s5 + $0x20] sm:$0xff]  ;;  %438 = vmatprep.mubr.msk.f32.mxu1 %vm470_vm0, %v469_v0  ;;  %v135_v3 = vld [vmem:[%s649_s5 + $0x18] sm:$0xff]  ;;  %vm56_vm3 = vcmask 523264   ;;  %v16_v35 = vstv %s657_s10  ;;  %vm316_vm4 = vcmask 261120   ;;  %v473_v62 = vmov 0  }
   0x2   :  { %427 = vmatpush3.msra.mxu1 %v137_v1  ;;  %407 = vmatprep.subr.mxu0 %v469_v0  ;;  %v134_v4 = vld [vmem:[%s649_s5 + $0x10] sm:$0xff]  ;;  %v48_v5 = vld [vmem:[%s650_s3 + $0x38] sm:$0xff]  ;;  %v133_v7 = vld [vmem:[%s649_s5 + $0x8] sm:$0xff]  ;;  %17 = vst [vmem:[#allocation2] sm:$0x1] %v16_v35 }
   0x3   :  { %428 = vmatprep.subr.mxu1 %v469_v0  ;;  %423 = vmatprep.mubr.msk.f32.mxu0 %vm470_vm0, %v469_v0  ;;  %v47_v6 = vld [vmem:[%s650_s3 + $0x30] sm:$0xff]  ;;  %v46_v8 = vld [vmem:[%s650_s3 + $0x28] sm:$0xff]  ;;  %v132_v9 = vld [vmem:[%s649_s5] sm:$0xff]  ;;  %s472_s5 = smov 48  }
   0x4   :  { %429 = vmatpush3.msra.mxu1 %v136_v2  ;;  %408 = vmatpush3.msra.mxu0 %v48_v5  ;;  %v45_v10 = vld [vmem:[%s650_s3 + $0x20] sm:$0xff]  ;;  %v224_v13 = vld [vmem:[%s652_s7 + $0x18] sm:$0xff]  ;;  %v223_v15 = vld [vmem:[%s652_s7 + $0x10] sm:$0xff] }
   0x5   :  { %430 = vmatprep.subr.mxu1 %v469_v0  ;;  %409 = vmatprep.subr.mxu0 %v469_v0  ;;  %v131_v11 = vld [vmem:[%s651_s1] sm:$0xff]  ;;  %v44_v14 = vld [vmem:[%s650_s3 + $0x18] sm:$0xff]  ;;  %v43_v16 = vld [vmem:[%s650_s3 + $0x10] sm:$0xff] }
   0x6   :  { %431 = vmatpush3.msra.mxu1 %v135_v3  ;;  %410 = vmatpush3.msra.mxu0 %v47_v6  ;;  %v225_v12 = vld [vmem:[%s652_s7 + $0x20] sm:$0xff]  ;;  %v222_v17 = vld [vmem:[%s652_s7 + $0x8] sm:$0xff] }
   0x7   :  { %432 = vmatprep.subr.mxu1 %v469_v0  ;;  %411 = vmatprep.subr.mxu0 %v469_v0  ;;  %v42_v18 = vld [vmem:[%s650_s3 + $0x8] sm:$0xff]  ;;  %v221_v19 = vld [vmem:[%s652_s7] sm:$0xff] }
   0x8   :  { %433 = vmatpush3.msra.mxu1 %v134_v4  ;;  %412 = vmatpush3.msra.mxu0 %v46_v8  ;;  %v41_v20 = vld [vmem:[%s650_s3] sm:$0xff] }
   0x9   :  { %434 = vmatprep.subr.mxu1 %v469_v0  ;;  %413 = vmatprep.subr.mxu0 %v469_v0  ;;  %v220_v21 = vld [vmem:[%s653_s2] sm:$0xff]  ;;  %s471_s2 = smov 32  }
   0xa   :  { %435 = vmatpush3.msra.mxu1 %v133_v7  ;;  %414 = vmatpush3.msra.mxu0 %v45_v10  ;;  %v40_v22 = vld [vmem:[%s654_s0] sm:$0xff] }
   0xb   :  { %436 = vmatprep.subr.mxu1 %v469_v0  ;;  %415 = vmatprep.subr.mxu0 %v469_v0  ;;  %v379_v23 = vld [vmem:[%s655_s6] ss:$0 sm:$0xff] }
   0xc   :  { %437 = vmatpush3.msra.mxu1 %v132_v9  ;;  %416 = vmatpush3.msra.mxu0 %v44_v14  ;;  %v381_v28 = vld [vmem:[%s656_s8] ss:$0 sm:$0xff] }
   0xd   :  { %439 = vmatmul.mubr.msk.f32.vlgmr.msra.gmra.mxu1 %vm145_vm1, %v131_v11  ;;  %441 = vmatprep.subr.mxu1 %v469_v0  ;;  %v377_v36 = vld [vmem:[%s658_s4] ss:$0 sm:$0xff] }
   0xe   :  { %442 = vmatpush3.msra.mxu1 %v225_v12  ;;  %451 = vmatprep.mubr.msk.f32.mxu1 %vm470_vm0, %v469_v0  ;;  %v383_v58 = vld [vmem:[%s659_s9] ss:$0 sm:$0xff] }
   0xf   :  { %443 = vmatprep.subr.mxu1 %v469_v0  ;;  %417 = vmatprep.subr.mxu0 %v469_v0  ;;  %v384_v63 = vld [vmem:[#allocation2] ss:$0 sm:$0xff] }
  0x10   :  { %444 = vmatpush3.msra.mxu1 %v224_v13  ;;  %418 = vmatpush3.msra.mxu0 %v43_v16 }
  0x11   :  { %445 = vmatprep.subr.mxu1 %v469_v0  ;;  %419 = vmatprep.subr.mxu0 %v469_v0 }
  0x12   :  { %446 = vmatpush3.msra.mxu1 %v223_v15  ;;  %420 = vmatpush3.msra.mxu0 %v42_v18 }
  0x13   :  { %447 = vmatprep.subr.mxu1 %v469_v0  ;;  %421 = vmatprep.subr.mxu0 %v469_v0 }
  0x14   :  { %448 = vmatpush3.msra.mxu1 %v222_v17  ;;  %422 = vmatpush3.msra.mxu0 %v41_v20 }
  0x15   :  { %449 = vmatprep.subr.mxu1 %v469_v0  ;;  %424 = vmatmul.mubr.msk.f32.vlgmr.msra.gmra.mxu0 %vm56_vm3, %v40_v22 }
  0x16   :  { %450 = vmatpush3.msra.mxu1 %v221_v19  ;;  %459 = vset.pattern.permute.xlu1 %v473_v62 }
  0x17   :  { %452 = vmatmul.mubr.msk.f32.vlgmr.msra.gmra.mxu1 %vm233_vm2, %v220_v21  ;;  %460 = vset.pattern.permute.xlu0 %v473_v62 }
  0xcd   :  { %v215_v24 = vpop.f32.mrf.mxu1 }
  0xce   :  { %v216_v25 = vadd.f32 %v379_v23, %v215_v24 }
  0xcf   :  { %v440_v26 = vpop.f32.mrf.mxu1 }
  0xd0   :  { %v219_v27 = vmax.f32 %v216_v25, 0.0 }
  0xd2   :  { %309 = vrot.lane.b32.xlu0 %v219_v27, %s471_s2 }
  0xd5   :  { %v126_v30 = vpop.f32.mrf.mxu0 }
  0xd6   :  { %v127_v37 = vadd.f32 %v377_v36, %v126_v30 }
  0xd7   :  { %v303_v29 = vpop.f32.mrf.mxu1  ;;  %v425_v33 = vpop.f32.mrf.mxu0 }
  0xd8   :  { %v304_v31 = vadd.f32 %v381_v28, %v303_v29  ;;  %v130_v38 = vmax.f32 %v127_v37, 0.0 }
  0xd9   :  { %v453_v32 = vpop.f32.mrf.mxu1 }
  0xda   :  { %v307_v34 = vmax.f32 %v304_v31, 0.0 }
  0xdc   :  { %313 = vrot.lane.b32.xlu0 %v307_v34, %s472_s5 }
 0x144   :  { %v310_v39 = vpop.permute.xlu0 %309 }
 0x145   :  { %v317_v40 = vsel %vm316_vm4, %v130_v38, %v310_v39 }
 0x14e   :  { %v314_v41 = vpop.permute.xlu0 %313 }
 0x14f   :  { %v318_v42 = vsel %vm145_vm1, %v317_v40, %v314_v41 }
 0x150   :  { %v319_v43 = vmul.f32 %v318_v42, %v318_v42 }
 0x152   :  { %v320_v44 = vsel %vm56_vm3, %v319_v43, 0.0 }
 0x153   :  { %v321_v45 = vrot.slane %v320_v44, 4 }
 0x155   :  { %v322_v46 = vadd.f32 %v321_v45, %v320_v44 }
 0x157   :  { %v323_v47 = vrot.slane %v322_v46, 2 }
 0x159   :  { %v324_v48 = vadd.f32 %v323_v47, %v322_v46 }
 0x15b   :  { %v325_v49 = vrot.slane %v324_v48, 1 }
 0x15d   :  { %v326_v50 = vadd.f32 %v325_v49, %v324_v48 }
 0x15f   :  { %461 = vrsqrt.f32 %v326_v50  ;;  %vm329_vm5 = vcmp.eq.f32.partialorder %v326_v50, inf  ;;  %v332_v53 = vand.u32 2147483648, %v326_v50  ;;  %vm331_vm6 = vcmp.eq.f32.partialorder %v326_v50, 0.0 }
 0x16c   :  { %v462_v51 = vpop.eup %461 }
 0x16d   :  { %v328_v52 = vmul.f32 %v462_v51, %v326_v50 }
 0x16f   :  { %v330_v54 = vsel %vm329_vm5, %v326_v50, %v328_v52 }
 0x170   :  { %v333_v55 = vsel %vm331_vm6, %v332_v53, %v330_v54 }
 0x171   :  { %v334_v56 = vmax.f32 %v333_v55, 1e-12 }
 0x173   :  { %463 = vrcp.f32 %v334_v56 }
 0x180   :  { %v464_v57 = vpop.eup %463 }
 0x181   :  { %v336_v59 = vmul.f32 %v464_v57, %v318_v42 }
 0x183   :  { %v344_v60 = vmul.f32 %v383_v58, %v336_v59 }
 0x185   :  { %v345_v61 = vsel %vm56_vm3, %v344_v60, 0.0 }
 0x186   :  { %346 = vadd.xlane.f32.xlu1 %v345_v61 }
 0x20f   :  { %v347_v0 = vpop.xlane.xlu1 %346 }
 0x210   :  { %v355_v1 = vadd.f32 %v384_v63, %v347_v0 }
 0x212   :  { %v356_v2 = vand.u32 2147483647, %v355_v1  ;;  %vm360_vm7 = vcmp.ge.f32.partialorder %v355_v1, 0.0 }
 0x214   :  { %v357_v3 = vsub.f32 0.0, %v356_v2 }
 0x216   :  { %v358_v4 = vmul.f32 1.442695, %v357_v3 }
 0x218   :  { %465 = vpow2.f32 %v358_v4 }
 0x225   :  { %v466_v5 = vpop.eup %465 }
 0x226   :  { %v361_v6 = vadd.f32 1.0, %v466_v5 }
 0x228   :  { %467 = vrcp.f32 %v361_v6 }
 0x235   :  { %v468_v7 = vpop.eup %467 }
 0x236   :  { %v364_v8 = vmul.f32 %v468_v7, %v466_v5 }
 0x238   :  { %v365_v9 = vsel %vm360_vm7, %v468_v7, %v364_v8 }
 0x239   :  { %368 = vperm.xlu1 %459, %v365_v9  }
 0x2b4   :  { %v369_v10 = vpop.permute.xlu1 %368 }
 0x2b5   :  { %v371_v11 = vsel %vm56_vm3, %v336_v59, %v369_v10 }
 0x2b6   :  { %372 = vst [vmem:[%s660_s11] sm:$0xff] %v371_v11 }

</bundles_post_ra>
